<compile_context>
chip_gen: v7x
topology: tpu7x:2x2x1
jax: 0.10.0
libtpu: 0.0.40
codegen_flags: <defaults>
</compile_context>

<pallas_src>
import functools

import jax
import jax.numpy as jnp
from jax.experimental import pallas as pl
from jax.experimental.pallas import tpu as pltpu


# --------------------------------------------------------------------------
# helpers
# --------------------------------------------------------------------------
def _round_up(a: int, b: int) -> int:
    return (a + b - 1) // b * b


_SUBLANE_MIN = {4: 8, 2: 16, 1: 32}  # min sublane tile per itemsize


# --------------------------------------------------------------------------
# Fused CPPN forward kernel
#   h = tanh(x @ W1.T); h = tanh(h @ Wi.T) ...; y = sigmoid(h @ Wout.T)
# All matmuls + activations run on a VMEM-resident (row_tile, 128) block, so
# intermediate activations never round-trip HBM (fusion feedback item).
# --------------------------------------------------------------------------
def _cppn_kernel(x_ref, w_in_ref, w_hid_ref, w_out_ref, o_ref, *, n_hidden):
    h = jnp.tanh(
        jnp.dot(x_ref[...], w_in_ref[...], preferred_element_type=jnp.float32)
    )
    for l in range(n_hidden):  # static unroll, n_hidden known at trace time
        h = jnp.tanh(
            jnp.dot(h, w_hid_ref[l], preferred_element_type=jnp.float32)
        )
    logits = jnp.dot(h, w_out_ref[...], preferred_element_type=jnp.float32)
    o_ref[...] = (1.0 / (1.0 + jnp.exp(-logits))).astype(o_ref.dtype)


def cppn_forward(x, w_in, w_hidden, w_out, *, row_tile: int = 128):
    """Fused CPPN forward.

    x:        (N, input_size)                 float
    w_in:     (net_size, input_size)          PyTorch nn.Linear weight (no bias)
    w_hidden: (n_hidden, net_size, net_size)  stacked hidden Linear weights
    w_out:    (out_ch, net_size)              final Linear weight
    returns:  (N, out_ch) = sigmoid(tanh-chain MLP)
    """
    F = 128  # lane-padded feature width (all feature dims <= 128 for a CPPN)
    x = x.astype(jnp.float32)
    N, input_size = x.shape
    net_size = w_in.shape[0]
    n_hidden = int(w_hidden.shape[0])
    out_ch = w_out.shape[0]
    assert input_size <= F and net_size <= F and out_ch <= F

    # Row tiling: multiple of 8 sublanes; keep >= 2 grid steps for typical
    # CPPN pixel counts so both v7x TensorCores participate.
    row_tile_eff = min(row_tile, _round_up(N, 8))
    n_pad = _round_up(N, row_tile_eff)
    grid = (n_pad // row_tile_eff,)

    # Zero-pad everything to 128-lane width (exact: padded rows/cols are zero,
    # tanh(0)=0 keeps padded activation lanes at zero through the chain).
    x_p = jnp.pad(x, ((0, n_pad - N), (0, F - input_size)))
    w_in_p = jnp.pad(
        w_in.T.astype(jnp.float32), ((0, F - input_size), (0, F - net_size))
    )
    if n_hidden == 0:
        w_hid_p = jnp.zeros((1, F, F), jnp.float32)
    else:
        w_hid_p = jnp.pad(
            jnp.swapaxes(w_hidden, 1, 2).astype(jnp.float32),
            ((0, 0), (0, F - net_size), (0, F - net_size)),
        )
    w_out_p = jnp.pad(
        w_out.T.astype(jnp.float32), ((0, F - net_size), (0, F - out_ch))
    )
    H = w_hid_p.shape[0]

    n_layers = n_hidden + 2
    out_pad = pl.pallas_call(
        functools.partial(_cppn_kernel, n_hidden=n_hidden),
        out_shape=jax.ShapeDtypeStruct((n_pad, F), jnp.float32),
        grid_spec=pltpu.PrefetchScalarGridSpec(
            num_scalar_prefetch=0,
            grid=grid,
            in_specs=[
                pl.BlockSpec((row_tile_eff, F), lambda i: (i, 0)),
                pl.BlockSpec((F, F), lambda i: (0, 0)),
                pl.BlockSpec((H, F, F), lambda i: (0, 0, 0)),
                pl.BlockSpec((F, F), lambda i: (0, 0)),
            ],
            out_specs=pl.BlockSpec((row_tile_eff, F), lambda i: (i, 0)),
        ),
        compiler_params=pltpu.CompilerParams(
            dimension_semantics=("parallel",),
        ),
        cost_estimate=pl.CostEstimate(
            flops=2 * n_pad * F * F * n_layers,
            transcendentals=n_pad * F * n_layers,
            bytes_accessed=4 * (2 * n_pad * F + F * F * n_layers),
        ),
    )(x_p, w_in_p, w_hid_p, w_out_p)

    return out_pad[:N, :out_ch]


# --------------------------------------------------------------------------
# Standalone elementwise activation kernels (CosActivation / SinActivation)
# Large lane-dense blocks: 1024 lanes x ~1 MiB tile, dtype-aware sublane tile.
# --------------------------------------------------------------------------
def _elementwise_kernel(x_ref, o_ref, *, fn):
    o_ref[...] = fn(x_ref[...]).astype(o_ref.dtype)


def _elementwise_pallas(x, fn, *, lanes: int = 1024, target_tile_bytes: int = 1 << 20):
    orig_shape = x.shape
    if not jnp.issubdtype(x.dtype, jnp.floating):
        # torch.cos/sin are float-only; cast explicitly (result stays float32).
        x = x.astype(jnp.float32)
    dtype = x.dtype
    itemsize = jnp.dtype(dtype).itemsize
    sub_min = _SUBLANE_MIN.get(itemsize, 8)

    total = x.size
    rows = -(-total // lanes)
    # ~1 MiB tile (double-buffered in+out ~= 4 MiB: fits default scoped VMEM
    # on v5e/v6e/v7x), rounded to the dtype's sublane multiple.
    desired_rows = max(
        sub_min, (target_tile_bytes // (lanes * itemsize)) // sub_min * sub_min
    )
    row_tile = min(desired_rows, _round_up(rows, sub_min))
    rows_pad = _round_up(rows, row_tile)
    padded_total = rows_pad * lanes

    x_flat = x.reshape(-1)
    if padded_total != total:  # pad only up to the block boundary
        x_flat = jnp.pad(x_flat, (0, padded_total - total))
    x2d = x_flat.reshape(rows_pad, lanes)

    grid = (rows_pad // row_tile,)
    out2d = pl.pallas_call(
        functools.partial(_elementwise_kernel, fn=fn),
        out_shape=jax.ShapeDtypeStruct((rows_pad, lanes), dtype),
        grid_spec=pltpu.PrefetchScalarGridSpec(
            num_scalar_prefetch=0,
            grid=grid,
            in_specs=[pl.BlockSpec((row_tile, lanes), lambda i: (i, 0))],
            out_specs=pl.BlockSpec((row_tile, lanes), lambda i: (i, 0)),
        ),
        compiler_params=pltpu.CompilerParams(
            dimension_semantics=("parallel",),
        ),
        cost_estimate=pl.CostEstimate(
            flops=0,
            transcendentals=padded_total,
            bytes_accessed=2 * padded_total * itemsize,
        ),
    )(x2d)

    out_flat = out2d.reshape(-1)
    if padded_total != total:
        out_flat = out_flat[:total]
    return out_flat.reshape(orig_shape)


def cos_activation(x):
    """CosActivation.forward == torch.cos(x)."""
    return _elementwise_pallas(x, jnp.cos)


def sin_activation(x):
    """SinActivation.forward == torch.sin(x)."""
    return _elementwise_pallas(x, jnp.sin)


# TODO(synk): CPPN.reset/set_weights/get_weights/render_image are host-side
# Python bookkeeping (weight mutation, numpy reshapes), not kernel work.

# --------------------------------------------------------------------------
# demo / correctness check
# --------------------------------------------------------------------------
if __name__ == "__main__":
    key = jax.random.PRNGKey(0)
    k1, k2, k3, k4, k5 = jax.random.split(key, 5)

    # Small CPPN config: img_size=16 -> 256 "pixels", input_size=11,
    # net_size=32, net_depth=4 (=> 2 hidden square layers), color output (3).
    img_size, input_size, net_size, net_depth, out_ch = 16, 11, 32, 4, 3
    N = img_size * img_size
    n_hidden = net_depth - 2

    x = jax.random.uniform(k1, (N, input_size), jnp.float32, -1.0, 1.0)
    w_in = jax.random.uniform(k2, (net_size, input_size), jnp.float32, -1.0, 1.0)
    w_hidden = jax.random.uniform(
        k3, (n_hidden, net_size, net_size), jnp.float32, -1.0, 1.0
    )
    w_out = jax.random.uniform(k4, (out_ch, net_size), jnp.float32, -1.0, 1.0)

    out = jax.block_until_ready(cppn_forward(x, w_in, w_hidden, w_out))

    # Pure-JAX reference of the PyTorch forward.
    h = jnp.tanh(x @ w_in.T)
    for l in range(n_hidden):
        h = jnp.tanh(h @ w_hidden[l].T)
    ref = jax.nn.sigmoid(h @ w_out.T)

    assert out.shape == (N, out_ch) and out.dtype == jnp.float32
    assert jnp.allclose(out, ref, atol=2e-2, rtol=2e-2)

    # Standalone Cos/Sin activation kernels (dependent modules).
    xa = jax.random.normal(k5, (2, 4, 16, 16), dtype=jnp.float32)
    oc = jax.block_until_ready(cos_activation(xa))
    osn = jax.block_until_ready(sin_activation(xa))
    assert oc.shape == xa.shape and osn.shape == xa.shape
    assert jnp.allclose(oc, jnp.cos(xa), atol=1e-5, rtol=1e-5)
    assert jnp.allclose(osn, jnp.sin(xa), atol=1e-5, rtol=1e-5)

    print("KERNEL_OK")
</pallas_src>

<mosaic_0001>
module attributes {stable_mosaic.version = 11 : i64} {
  func.func @_cppn_kernel(%arg0: i32, %arg1: memref<128x128xf32, #tpu.memory_space<vmem>>, %arg2: memref<128x128xf32, #tpu.memory_space<vmem>>, %arg3: memref<2x128x128xf32, #tpu.memory_space<vmem>>, %arg4: memref<128x128xf32, #tpu.memory_space<vmem>>, %arg5: memref<128x128xf32, #tpu.memory_space<vmem>>) attributes {dimension_semantics = [#tpu.dimension_semantics<parallel>], iteration_bounds = array<i64: 2>, scalar_prefetch = 0 : i64, scratch_operands = 0 : i64, tpu.core_type = #tpu.core_type<tc>, window_params = [{transform_indices = @transform_0, window_bounds = array<i64: 128, 128>}, {pipeline_mode = #tpu.pipeline_mode<synchronous>, transform_indices = @transform_1, window_bounds = array<i64: 128, 128>}, {pipeline_mode = #tpu.pipeline_mode<synchronous>, transform_indices = @transform_2, window_bounds = array<i64: 2, 128, 128>}, {pipeline_mode = #tpu.pipeline_mode<synchronous>, transform_indices = @transform_3, window_bounds = array<i64: 128, 128>}, {transform_indices = @transform_4, window_bounds = array<i64: 128, 128>}]} {
    %c0 = arith.constant 0 : index
    %c0_0 = arith.constant 0 : index
    %0 = vector.load %arg1[%c0, %c0_0] : memref<128x128xf32, #tpu.memory_space<vmem>>, vector<128x128xf32>
    %c0_1 = arith.constant 0 : index
    %c0_2 = arith.constant 0 : index
    %1 = vector.load %arg2[%c0_1, %c0_2] : memref<128x128xf32, #tpu.memory_space<vmem>>, vector<128x128xf32>
    %cst = arith.constant dense<0.000000e+00> : vector<128x128xf32>
    %2 = tpu.matmul %0, %1, %cst {dimension_numbers = #tpu.dot_dimension_numbers<[1], [0], [0], [1], [0, 0, 1, 1], [], []>} : vector<128x128xf32>, vector<128x128xf32>, vector<128x128xf32> -> vector<128x128xf32>
    %3 = math.tanh %2 : vector<128x128xf32>
    %c0_3 = arith.constant 0 : index
    %c0_4 = arith.constant 0 : index
    %c0_5 = arith.constant 0 : index
    %4 = vector.load %arg3[%c0_3, %c0_4, %c0_5] : memref<2x128x128xf32, #tpu.memory_space<vmem>>, vector<1x128x128xf32>
    %5 = vector.shape_cast %4 : vector<1x128x128xf32> to vector<128x128xf32>
    %cst_6 = arith.constant dense<0.000000e+00> : vector<128x128xf32>
    %6 = tpu.matmul %3, %5, %cst_6 {dimension_numbers = #tpu.dot_dimension_numbers<[1], [0], [0], [1], [0, 0, 1, 1], [], []>} : vector<128x128xf32>, vector<128x128xf32>, vector<128x128xf32> -> vector<128x128xf32>
    %7 = math.tanh %6 : vector<128x128xf32>
    %c1 = arith.constant 1 : index
    %c0_7 = arith.constant 0 : index
    %c0_8 = arith.constant 0 : index
    %8 = vector.load %arg3[%c1, %c0_7, %c0_8] : memref<2x128x128xf32, #tpu.memory_space<vmem>>, vector<1x128x128xf32>
    %9 = vector.shape_cast %8 : vector<1x128x128xf32> to vector<128x128xf32>
    %cst_9 = arith.constant dense<0.000000e+00> : vector<128x128xf32>
    %10 = tpu.matmul %7, %9, %cst_9 {dimension_numbers = #tpu.dot_dimension_numbers<[1], [0], [0], [1], [0, 0, 1, 1], [], []>} : vector<128x128xf32>, vector<128x128xf32>, vector<128x128xf32> -> vector<128x128xf32>
    %11 = math.tanh %10 : vector<128x128xf32>
    %c0_10 = arith.constant 0 : index
    %c0_11 = arith.constant 0 : index
    %12 = vector.load %arg4[%c0_10, %c0_11] : memref<128x128xf32, #tpu.memory_space<vmem>>, vector<128x128xf32>
    %cst_12 = arith.constant dense<0.000000e+00> : vector<128x128xf32>
    %13 = tpu.matmul %11, %12, %cst_12 {dimension_numbers = #tpu.dot_dimension_numbers<[1], [0], [0], [1], [0, 0, 1, 1], [], []>} : vector<128x128xf32>, vector<128x128xf32>, vector<128x128xf32> -> vector<128x128xf32>
    %cst_13 = arith.constant 0.000000e+00 : f32
    %14 = vector.broadcast %cst_13 : f32 to vector<128x128xf32>
    %15 = arith.subf %14, %13 : vector<128x128xf32>
    %16 = math.exp %15 : vector<128x128xf32>
    %cst_14 = arith.constant 1.000000e+00 : f32
    %17 = vector.broadcast %cst_14 : f32 to vector<128x128xf32>
    %18 = arith.addf %17, %16 : vector<128x128xf32>
    %cst_15 = arith.constant 1.000000e+00 : f32
    %19 = vector.broadcast %cst_15 : f32 to vector<128x128xf32>
    %20 = arith.divf %19, %18 : vector<128x128xf32>
    %c0_16 = arith.constant 0 : index
    %c0_17 = arith.constant 0 : index
    %21 = vector.load %arg5[%c0_16, %c0_17] : memref<128x128xf32, #tpu.memory_space<vmem>>, vector<128x128xf32>
    tpu.vector_store %arg5[%c0_16, %c0_17], %20 {strides = array<i32>} : memref<128x128xf32, #tpu.memory_space<vmem>>, vector<128x128xf32>,
    return
  }
  func.func @transform_0(%arg0: i32) -> (i32, i32) {
    %c0_i32 = arith.constant 0 : i32
    %c0_i32_0 = arith.constant 0 : i32
    return %arg0, %c0_i32 : i32, i32
  }
  func.func @transform_1(%arg0: i32) -> (i32, i32) {
    %c0_i32 = arith.constant 0 : i32
    %c0_i32_0 = arith.constant 0 : i32
    %c0_i32_1 = arith.constant 0 : i32
    return %c0_i32, %c0_i32_0 : i32, i32
  }
  func.func @transform_2(%arg0: i32) -> (i32, i32, i32) {
    %c0_i32 = arith.constant 0 : i32
    %c0_i32_0 = arith.constant 0 : i32
    %c0_i32_1 = arith.constant 0 : i32
    %c0_i32_2 = arith.constant 0 : i32
    return %c0_i32, %c0_i32_0, %c0_i32_1 : i32, i32, i32
  }
  func.func @transform_3(%arg0: i32) -> (i32, i32) {
    %c0_i32 = arith.constant 0 : i32
    %c0_i32_0 = arith.constant 0 : i32
    %c0_i32_1 = arith.constant 0 : i32
    return %c0_i32, %c0_i32_0 : i32, i32
  }
  func.func @transform_4(%arg0: i32) -> (i32, i32) {
    %c0_i32 = arith.constant 0 : i32
    %c0_i32_0 = arith.constant 0 : i32
    return %arg0, %c0_i32 : i32, i32
  }
}

</mosaic_0001>

<bundles_post_ra>
// kernel: tpu_custom_call.1
= control target key start
LH: loop header
LB: loop body
LE: loop exit
PB: predicated region body
PF: predicated region fallthrough
CT: control target
= control target key end

     0   :  { %9 = vsyncpa [#allocation3], 0  ;;  %s2478_s0 = inlined_call_operand.hbm [shape: f32[256,128], index: 0, kind: input, shape index: {}]   ;;  %s2479_s1 = inlined_call_operand.hbm [shape: f32[128,128], index: 1, kind: input, shape index: {}]   ;;  %s2480_s2 = inlined_call_operand.hbm [shape: f32[2,128,128], index: 2, kind: input, shape index: {}]   ;;  %s2481_s3 = inlined_call_operand.hbm [shape: f32[128,128], index: 3, kind: input, shape index: {}]   ;;  %s2482_s4 = inlined_call_operand.hbm [shape: f32[256,128], index: 4, kind: output, shape index: {}]  }
   0x1   :  { %11 = vsyncpa [#allocation3 + $0x1], 0 }
   0x2   :  { %12 = vsyncpa [#allocation6], 0 }
   0x3   :  { %13 = vsyncpa [#allocation9], 0 }
   0x4   :  { %14 = vsyncpa [#allocation4], 0 }
   0x5   :  { %16 = vsyncpa [#allocation4 + $0x1], 0  ;;  %s2166_s15 = smov 0   ;;  %s2168_s16 = smov 0  }
   0x6   :  { %s2170_s17 = smov 0   ;;  %s2172_s18 = smov 0  }
   0x7 LB: > { %s2187_s19 = sadd.s32 4294967295, %s2130_s18   ;;  %s1199_s20 = sadd.s32 4294967294, %s2130_s18   ;;  %s2130_s18 = sphi %s2172_s18, %s2505_s18   ;;  %s2126_s17 = sphi %s2170_s17, %s2504_s17   ;;  %s2122_s16 = sphi %s2168_s16, %s2503_s16   ;;  %s2118_s15 = sphi %s2166_s15, %s2502_s15  }
   0x8   : > { %p42_p0 = scmp.ne.s32.totalorder %s2122_s16, %s2118_s15  ;;  %p2483_p1 = scmp.eq.s32.totalorder %s2187_s19, 0 }
   0x9   : > { %p135_p3 = scmp.eq.s32.totalorder %s1199_s20, 1  ;;  %p1200_p5 = scmp.ge.s32.totalorder %s2130_s18, 1 }
   0xa   : > { %p2196_p4 = por %p2483_p1, %p42_p0  ;;  %p142_p7 = scmp.lt.s32.totalorder %s2130_s18, 3 }
   0xb   : > { %p2201_p6 = por %p135_p3, %p42_p0  ;;  %s2132_s24 = smov [#allocation5]  }
   0xc   : > { %s2486_s21 = scalar_select %p2196_p4, 1, 0 }
   0xd   : > { %s2487_s22 = scalar_select %p2201_p6, 1, 0 }
   0xe   : > { %p2206_p8 = pnand %p1200_p5, %p142_p7  ;;  %s154_s25 = sshll.u32 %s2132_s24, 4  ;;  %s2210_s25 = int_to_ptr.vmem [resolvable:$true] %s154_s25 }
   0xf   : > { %s2133_s27 = smov [#allocation7]   ;;  %s2134_s29 = smov [#allocation8]  }
  0x10   : > { %s2488_s23 = scalar_select %p2206_p8, 1, 0 }
  0x11   : > { %p1717_p9 = pneg %p2206_p8  ;;  %s167_s28 = sshll.u32 %s2133_s27, 4  ;;  %s2221_s28 = int_to_ptr.vmem [resolvable:$true] %s167_s28 }
  0x12   : > { %s2223_s30 = sshll.u32 %s2134_s29, 4  ;;  %s1942_s7 = scalar_lea.hbm %s2479_s1, 2048  ;;  %s181_s30 = int_to_ptr.vmem [resolvable:$true] %s2223_s30 }
  0x13   : > { %p2217_p11 = pnand %p1717_p9, %p2483_p1  ;;  %p1943_p12 = scmp.ne.s32.totalorder %s2479_s1, %s1942_s7 }
  0x14   : > { %p1949_p5 = scmp.lt.u32.totalorder %s1942_s7, %s2479_s1 }
  0x15   : > { %p2233_p13 = pneg %p2217_p11 }
  0x17   : > { %p1945_p0 = pnand %p2233_p13, %p1943_p12 }
  0x19   : > { %p1946_p3 = pneg %p1945_p0 }
  0x1b   : > { %p1951_p7 = pnand %p1949_p5, %p1946_p3 }
  0x1d   : > { %1954 = shalt.err (!%p1951_p7)
}
  0x1e   : > { %s1955_s13 = scalar_lea.vmem %s2210_s25, 2048  ;;  %p1963_p2 = scmp.lt.s32.totalorder %s2210_s25, %s2210_s25 }
  0x1f   : > { %p1956_p9 = scmp.ne.s32.totalorder %s2210_s25, %s1955_s13  ;;  %p1964_p6 = scmp.lt.s32.totalorder %s1955_s13, %s1955_s13 }
  0x21   : > { %p1958_p10 = pnand %p1956_p9, %p2233_p13  ;;  %p1965_p12 = por %p1964_p6, %p1963_p2 }
  0x23   : > { %p1959_p1 = pneg %p1958_p10 }
  0x25   : > { %p1966_p0 = pnand %p1965_p12, %p1959_p1 }
  0x27   : > { %1969 = shalt.err (!%p1966_p0)
}
  0x28   : > { %s2135_s14 = smov 128   ;;  %s2136_s20 = smov 8  }
  0x29   : > { %1720 = dma.hbm_to_vmem [thread:$0]  (!%p2217_p11), %s2479_s1, 2048, %s2210_s25, [#allocation6], %s2135_s14, %s2135_s14, %s2136_s20  }
  0x2a   : > { %s1970_s6 = scalar_lea.hbm %s2480_s2, 4096 }
  0x2b   : > { %p1971_p1 = scmp.ne.s32.totalorder %s2480_s2, %s1970_s6  ;;  %p1977_p10 = scmp.lt.u32.totalorder %s1970_s6, %s2480_s2 }
  0x2d   : > { %p1973_p2 = pnand %p1971_p1, %p2233_p13 }
  0x2f   : > { %p1974_p6 = pneg %p1973_p2 }
  0x31   : > { %p1979_p3 = pnand %p1977_p10, %p1974_p6 }
  0x33   : > { %1982 = shalt.err (!%p1979_p3)
}
  0x34   : > { %s1983_s25 = scalar_lea.vmem %s2221_s28, 4096  ;;  %p1991_p12 = scmp.lt.s32.totalorder %s2221_s28, %s2221_s28 }
  0x35   : > { %p1984_p5 = scmp.ne.s32.totalorder %s2221_s28, %s1983_s25  ;;  %p1992_p0 = scmp.lt.s32.totalorder %s1983_s25, %s1983_s25 }
  0x37   : > { %p1986_p7 = pnand %p1984_p5, %p2233_p13  ;;  %p1993_p1 = por %p1992_p0, %p1991_p12 }
  0x39   : > { %p1987_p9 = pneg %p1986_p7 }
  0x3b   : > { %p1994_p2 = pnand %p1993_p1, %p1987_p9 }
  0x3d   : > { %1997 = shalt.err (!%p1994_p2)
}
  0x3e   : > { %1723 = dma.hbm_to_vmem [thread:$0]  (!%p2217_p11), %s2480_s2, 4096, %s2221_s28, [#allocation6], %s2135_s14, %s2135_s14, %s2136_s20  }
  0x3f   : > { %s1998_s29 = scalar_lea.hbm %s2481_s3, 2048 }
  0x40   : > { %p1999_p6 = scmp.ne.s32.totalorder %s2481_s3, %s1998_s29  ;;  %p2005_p5 = scmp.lt.u32.totalorder %s1998_s29, %s2481_s3 }
  0x42   : > { %p2001_p10 = pnand %p1999_p6, %p2233_p13 }
  0x44   : > { %p2002_p3 = pneg %p2001_p10 }
  0x46   : > { %p2007_p7 = pnand %p2005_p5, %p2002_p3 }
  0x48   : > { %2010 = shalt.err (!%p2007_p7)
}
  0x49   : > { %s2011_s9 = scalar_lea.vmem %s181_s30, 2048  ;;  %p2019_p1 = scmp.lt.s32.totalorder %s181_s30, %s181_s30 }
  0x4a   : > { %p2012_p9 = scmp.ne.s32.totalorder %s181_s30, %s2011_s9  ;;  %p2020_p2 = scmp.lt.s32.totalorder %s2011_s9, %s2011_s9 }
  0x4c   : > { %p2014_p12 = pnand %p2012_p9, %p2233_p13  ;;  %p2021_p4 = por %p2020_p2, %p2019_p1 }
  0x4e   : > { %p2015_p0 = pneg %p2014_p12 }
  0x50   : > { %p2022_p8 = pnand %p2021_p4, %p2015_p0 }
  0x52   : > { %2025 = shalt.err (!%p2022_p8)
}
  0x53   : > { %1726 = dma.hbm_to_vmem [thread:$0]  (!%p2217_p11), %s2481_s3, 2048, %s181_s30, [#allocation9], %s2135_s14, %s2135_s14, %s2136_s20  }
  0x54   : > { %s2306_s10 = sadd.s32 1, %s2130_s18   ;;  %s29_s25 = sadd.s32 1, %s2126_s17 }
  0x55   : > { %s26_s26 = ssub.s32 %s2130_s18, %s2306_s10  ;;  %p36_p8 = scmp.ne.s32.totalorder %s2126_s17, %s2122_s16 }
  0x56   : > { %p27_p4 = scmp.eq.s32.totalorder %s26_s26, 0  ;;  %p37_p13 = scmp.eq.s32.totalorder %s2130_s18, 0 }
  0x57   : > { %p1738_p6 = scmp.lt.s32.totalorder %s2130_s18, 2  ;;  %p2491_p3 = scmp.eq.s32.totalorder %s2187_s19, 1 }
  0x58   : > { %s2316_s12 = scalar_select %p27_p4, %s2126_s17, %s29_s25  }
  0x59   : > { %p38_p10 = por %p37_p13, %p36_p8  ;;  %p2320_p5 = por %p2491_p3, %p36_p8 }
  0x5a   : > { %s194_s24 = sand.u32 1, %s2126_s17   ;;  %s1219_s27 = sshll.u32 %s2130_s18, 11 }
  0x5b   : > { %s1205_s30 = sshll.u32 %s194_s24, 7  ;;  %s2329_s6 = scalar_lea.hbm %s2478_s0, %s1219_s27 }
  0x5c   : > { %s198_s7 = scalar_lea.vmem [#allocation2], %s1205_s30  ;;  %p2331_p11 = pnand %p1738_p6, %p38_p10 }
  0x5d   : > { %s205_s8 = sshll.u32 %s198_s7, 4  ;;  %s2337_s28 = scalar_lea.sflag [#allocation3], %s194_s24  ;;  %s2335_s8 = int_to_ptr.vmem [resolvable:$true] %s205_s8 }
  0x5e   : > { %s2026_s11 = scalar_lea.hbm %s2329_s6, 2048  ;;  %p2028_p9 = pneg %p2331_p11 }
  0x5f   : > { %p2027_p7 = scmp.ne.s32.totalorder %s2329_s6, %s2026_s11  ;;  %s2031_s27 = scalar_lea.hbm %s2478_s0, 4096 }
  0x60   : > { %p2032_p1 = scmp.lt.u32.totalorder %s2329_s6, %s2478_s0  ;;  %p2033_p2 = scmp.lt.u32.totalorder %s2031_s27, %s2026_s11 }
  0x61   : > { %p2029_p12 = pnand %p2028_p9, %p2027_p7  ;;  %p2035_p8 = scmp.lt.u32.totalorder %s2026_s11, %s2329_s6 }
  0x62   : > { %p2034_p4 = por %p2033_p2, %p2032_p1 }
  0x63   : > { %p2030_p0 = pneg %p2029_p12 }
  0x64   : > { %p2036_p13 = por %p2035_p8, %p2034_p4 }
  0x66   : > { %p2037_p6 = pnand %p2036_p13, %p2030_p0 }
  0x68   : > { %2040 = shalt.err (!%p2037_p6)
}
  0x69   : > { %s2041_s24 = scalar_lea.vmem %s2335_s8, 2048  ;;  %s2137_s5 = smov [#allocation2]  }
  0x6a   : > { %p2042_p10 = scmp.ne.s32.totalorder %s2335_s8, %s2041_s24  ;;  %s2046_s7 = sshll.u32 %s2137_s5, 4  ;;  %s2047_s7 = int_to_ptr.vmem [resolvable:$false] %s2046_s7 }
  0x6b   : > { %s2048_s26 = scalar_lea.vmem %s2047_s7, 4096  ;;  %p2049_p12 = scmp.lt.s32.totalorder %s2335_s8, %s2047_s7 }
  0x6c   : > { %p2044_p3 = pnand %p2042_p10, %p2028_p9  ;;  %p2050_p1 = scmp.lt.s32.totalorder %s2048_s26, %s2041_s24 }
  0x6e   : > { %p2045_p7 = pneg %p2044_p3  ;;  %p2051_p2 = por %p2050_p1, %p2049_p12 }
  0x70   : > { %p2052_p4 = pnand %p2051_p2, %p2045_p7 }
  0x72   : > { %2055 = shalt.err (!%p2052_p4)
}
  0x73   : > { %1730 = dma.hbm_to_vmem [thread:$0]  (!%p2331_p11), %s2329_s6, 2048, %s2335_s8, %s2337_s28, %s2135_s14, %s2135_s14, %s2136_s20  }
  0x74   : > { %p2494_p9 = scmp.ne.s32.totalorder %s2488_s23, 0 }
  0x75   : > { %s2371_s11 = sand.u32 (!%p2494_p9), 1, %s2122_s16   ;;  %p2495_p0 = scmp.ne.s32.totalorder (!%p2494_p9), %s2486_s21, 0 }
  0x76   : > { %217 = sbr.rel (%p2494_p9) target bundleno = 1129 (0x469), region = 36  ;;  %s1209_s25 = sshll.u32 (!%p2494_p9), %s2371_s11, 7 }
  0x77   : > { %s220_s27 = scalar_lea.sflag (!%p2494_p9), [#allocation3], %s2371_s11  ;;  %s2377_s9 = scalar_lea.vmem (!%p2494_p9), [#allocation2], %s1209_s25 }
  0x7d   : > { %2101 = dma.done.wait (%p2495_p0), %s220_s27, 2048  }
  0x7e   : > { %2103 = vsyncadd (%p2495_p0), %s220_s27, 4294965248  ;;  %p2496_p11 = scmp.eq.s32.totalorder %s2187_s19, 0 }
  0x80   : > { %2105 = dma.done.wait (%p2496_p11), [#allocation6], 6144   ;;  %p2497_p8 = pmov %p2496_p11 }
  0x82   : > { %2107 = vsyncadd (%p2497_p8), [#allocation6], 4294961152  ;;  %p2498_p13 = pmov %p2497_p8 }
  0x83   : > { %p2499_p6 = pmov %p2497_p8 }
  0x84   : > { %2109 = dma.done.wait (%p2498_p13), [#allocation9], 2048  }
  0x85   : > { %2111 = vsyncadd (%p2499_p6), [#allocation9], 4294965248  ;;  %v278_v0 = vld [vmem:[#allocation5] sm:$0xff]  ;;  %v279_v1 = vld [vmem:[#allocation5 + $0x8] sm:$0xff]  ;;  %s2409_s21 = scalar_lea.vmem [#allocation10], %s1209_s25  ;;  %s1220_s23 = sshll.u32 %s2187_s19, 11 }
  0x86   : > { %v280_v2 = vld [vmem:[#allocation5 + $0x10] sm:$0xff]  ;;  %v1573_v3 = vpack.c.bf16 %v279_v1, %v278_v0  ;;  %v281_v4 = vld [vmem:[#allocation5 + $0x18] sm:$0xff]  ;;  %v282_v6 = vld [vmem:[#allocation5 + $0x20] sm:$0xff]  ;;  %s1097_s14 = sshll.u32 %s2409_s21, 4  ;;  %s2430_s8 = scalar_lea.hbm %s2482_s4, %s1220_s23  ;;  %s2432_s14 = int_to_ptr.vmem [resolvable:$true] %s1097_s14 }
  0x87   : > { %v1577_v5 = vpack.c.bf16 %v281_v4, %v280_v2  ;;  %v283_v7 = vld [vmem:[#allocation5 + $0x28] sm:$0xff]  ;;  %v262_v9 = vld [vmem:[%s2377_s9] sm:$0xff]  ;;  %v284_v10 = vld [vmem:[#allocation5 + $0x30] sm:$0xff]  ;;  %s1084_s28 = scalar_lea.sflag [#allocation4], %s2371_s11  ;;  %s2056_s30 = scalar_lea.vmem %s2432_s14, 2048 }
  0x88   : > { %1574 = vmatprep.subr.bf16.mxu0 %v1573_v3  ;;  %v1581_v8 = vpack.c.bf16 %v283_v7, %v282_v6  ;;  %v285_v11 = vld [vmem:[#allocation5 + $0x38] sm:$0xff]  ;;  %1381 = vmatprep.mubr.f32.mxu0 %v262_v9  ;;  %v286_v13 = vld [vmem:[#allocation5 + $0x40] sm:$0xff]  ;;  %v287_v14 = vld [vmem:[#allocation5 + $0x48] sm:$0xff]  ;;  %p2057_p10 = scmp.ne.s32.totalorder %s2432_s14, %s2056_s30  ;;  %s2138_s19 = smov [#allocation10]  }
  0x89   : > { %1576 = vmatpush3.bf16.msra.mxu0 %v1573_v3  ;;  %v1585_v12 = vpack.c.bf16 %v285_v11, %v284_v10  ;;  %v455_v15 = vld [vmem:[#allocation7] sm:$0xff]  ;;  %v456_v16 = vld [vmem:[#allocation7 + $0x8] sm:$0xff]  ;;  %v457_v17 = vld [vmem:[#allocation7 + $0x10] sm:$0xff]  ;;  %v1589_v21 = vpack.c.bf16 %v287_v14, %v286_v13  ;;  %s2060_s29 = sshll.u32 %s2138_s19, 4  ;;  %s2061_s29 = int_to_ptr.vmem [resolvable:$false] %s2060_s29 }
  0x8a   : > { %1578 = vmatprep.subr.bf16.mxu0 %v1577_v5  ;;  %v458_v18 = vld [vmem:[#allocation7 + $0x18] sm:$0xff]  ;;  %v1605_v19 = vpack.c.bf16 %v456_v16, %v455_v15  ;;  %v459_v22 = vld [vmem:[#allocation7 + $0x20] sm:$0xff]  ;;  %v460_v23 = vld [vmem:[#allocation7 + $0x28] sm:$0xff]  ;;  %p2058_p3 = pnand %p2057_p10, %p2320_p5  ;;  %s2062_s24 = scalar_lea.vmem %s2061_s29, 4096 }
  0x8b   : > { %v1609_v20 = vpack.c.bf16 %v458_v18, %v457_v17  ;;  %v288_v24 = vld [vmem:[#allocation5 + $0x50] sm:$0xff]  ;;  %v289_v25 = vld [vmem:[#allocation5 + $0x58] sm:$0xff]  ;;  %v1613_v26 = vpack.c.bf16 %v460_v23, %v459_v22  ;;  %v290_v30 = vld [vmem:[#allocation5 + $0x60] sm:$0xff]  ;;  %p2063_p12 = scmp.lt.s32.totalorder %s2432_s14, %s2061_s29  ;;  %p2064_p1 = scmp.lt.s32.totalorder %s2062_s24, %s2056_s30 }
  0x8c   : > { %1606 = vmatprep.subr.bf16.mxu1 %v1605_v19  ;;  %v1593_v27 = vpack.c.bf16 %v289_v25, %v288_v24  ;;  %v461_v28 = vld [vmem:[#allocation7 + $0x30] sm:$0xff]  ;;  %v462_v29 = vld [vmem:[#allocation7 + $0x38] sm:$0xff]  ;;  %v291_v31 = vld [vmem:[#allocation5 + $0x68] sm:$0xff]  ;;  %p2059_p7 = pneg %p2058_p3 }
  0x8d   : > { %1580 = vmatpush3.bf16.msra.mxu0 %v1577_v5  ;;  %1608 = vmatpush3.bf16.msra.mxu1 %v1605_v19  ;;  %v1617_v32 = vpack.c.bf16 %v462_v29, %v461_v28  ;;  %v1597_v33 = vpack.c.bf16 %v291_v31, %v290_v30  ;;  %v463_v34 = vld [vmem:[#allocation7 + $0x40] sm:$0xff]  ;;  %v464_v35 = vld [vmem:[#allocation7 + $0x48] sm:$0xff]  ;;  %v292_v36 = vld [vmem:[#allocation5 + $0x70] sm:$0xff]  ;;  %p2065_p2 = por %p2064_p1, %p2063_p12 }
  0x8e   : > { %1582 = vmatprep.subr.bf16.mxu0 %v1581_v8  ;;  %1610 = vmatprep.subr.bf16.mxu1 %v1609_v20  ;;  %v293_v37 = vld [vmem:[#allocation5 + $0x78] sm:$0xff]  ;;  %v1621_v38 = vpack.c.bf16 %v464_v35, %v463_v34  ;;  %v263_v40 = vld [vmem:[%s2377_s9 + $0x8] sm:$0xff]  ;;  %v264_v41 = vld [vmem:[%s2377_s9 + $0x10] sm:$0xff] }
  0x8f   : > { %v1601_v39 = vpack.c.bf16 %v293_v37, %v292_v36  ;;  %v265_v42 = vld [vmem:[%s2377_s9 + $0x18] sm:$0xff]  ;;  %v266_v43 = vld [vmem:[%s2377_s9 + $0x20] sm:$0xff]  ;;  %v267_v44 = vld [vmem:[%s2377_s9 + $0x28] sm:$0xff]  ;;  %p2066_p4 = pnand %p2065_p2, %p2059_p7 }
  0x90   : > { %v268_v45 = vld [vmem:[%s2377_s9 + $0x30] sm:$0xff]  ;;  %v269_v46 = vld [vmem:[%s2377_s9 + $0x38] sm:$0xff]  ;;  %v270_v47 = vld [vmem:[%s2377_s9 + $0x40] sm:$0xff] }
  0x91   : > { %1584 = vmatpush3.bf16.msra.mxu0 %v1581_v8  ;;  %1612 = vmatpush3.bf16.msra.mxu1 %v1609_v20  ;;  %v271_v48 = vld [vmem:[%s2377_s9 + $0x48] sm:$0xff]  ;;  %v272_v49 = vld [vmem:[%s2377_s9 + $0x50] sm:$0xff]  ;;  %v273_v50 = vld [vmem:[%s2377_s9 + $0x58] sm:$0xff] }
  0x92   : > { %1586 = vmatprep.subr.bf16.mxu0 %v1585_v12  ;;  %1614 = vmatprep.subr.bf16.mxu1 %v1613_v26  ;;  %v274_v51 = vld [vmem:[%s2377_s9 + $0x60] sm:$0xff]  ;;  %v275_v52 = vld [vmem:[%s2377_s9 + $0x68] sm:$0xff]  ;;  %v276_v53 = vld [vmem:[%s2377_s9 + $0x70] sm:$0xff] }
  0x93   : > { %v277_v54 = vld [vmem:[%s2377_s9 + $0x78] sm:$0xff]  ;;  %v465_v55 = vld [vmem:[#allocation7 + $0x50] sm:$0xff]  ;;  %v467_v58 = vld [vmem:[#allocation7 + $0x60] sm:$0xff] }
  0x94   : > { %v466_v56 = vld [vmem:[#allocation7 + $0x58] sm:$0xff]  ;;  %v468_v59 = vld [vmem:[#allocation7 + $0x68] sm:$0xff]  ;;  %v469_v61 = vld [vmem:[#allocation7 + $0x70] sm:$0xff] }
  0x95   : > { %1588 = vmatpush3.bf16.msra.mxu0 %v1585_v12  ;;  %1616 = vmatpush3.bf16.msra.mxu1 %v1613_v26  ;;  %v1625_v57 = vpack.c.bf16 %v466_v56, %v465_v55  ;;  %v1629_v60 = vpack.c.bf16 %v468_v59, %v467_v58  ;;  %v470_v62 = vld [vmem:[#allocation7 + $0x78] sm:$0xff]  ;;  %v633_v0 = vld [vmem:[#allocation7 + $0x80] sm:$0xff]  ;;  %v634_v1 = vld [vmem:[#allocation7 + $0x88] sm:$0xff] }
  0x96   : > { %1590 = vmatprep.subr.bf16.mxu0 %v1589_v21  ;;  %1618 = vmatprep.subr.bf16.mxu1 %v1617_v32  ;;  %v1633_v63 = vpack.c.bf16 %v470_v62, %v469_v61  ;;  %v635_v2 = vld [vmem:[#allocation7 + $0x90] sm:$0xff]  ;;  %v1637_v3 = vpack.c.bf16 %v634_v1, %v633_v0  ;;  %v636_v4 = vld [vmem:[#allocation7 + $0x98] sm:$0xff]  ;;  %v637_v6 = vld [vmem:[#allocation7 + $0xa0] sm:$0xff] }
  0x97   : > { %v1641_v5 = vpack.c.bf16 %v636_v4, %v635_v2  ;;  %v638_v7 = vld [vmem:[#allocation7 + $0xa8] sm:$0xff]  ;;  %v639_v9 = vld [vmem:[#allocation7 + $0xb0] sm:$0xff]  ;;  %v640_v10 = vld [vmem:[#allocation7 + $0xb8] sm:$0xff] }
  0x98   : > { %v1645_v8 = vpack.c.bf16 %v638_v7, %v637_v6  ;;  %v1649_v11 = vpack.c.bf16 %v640_v10, %v639_v9  ;;  %v641_v12 = vld [vmem:[#allocation7 + $0xc0] sm:$0xff]  ;;  %v642_v13 = vld [vmem:[#allocation7 + $0xc8] sm:$0xff]  ;;  %v812_v58 = vld [vmem:[#allocation8 + $0x10] sm:$0xff] }
  0x99   : > { %1592 = vmatpush3.bf16.msra.mxu0 %v1589_v21  ;;  %1620 = vmatpush3.bf16.msra.mxu1 %v1617_v32  ;;  %v1653_v14 = vpack.c.bf16 %v642_v13, %v641_v12  ;;  %v810_v56 = vld [vmem:[#allocation8] sm:$0xff]  ;;  %v816_v1 = vld [vmem:[#allocation8 + $0x30] sm:$0xff]  ;;  %v817_v2 = vld [vmem:[#allocation8 + $0x38] sm:$0xff] }
  0x9a   : > { %1594 = vmatprep.subr.bf16.mxu0 %v1593_v27  ;;  %1622 = vmatprep.subr.bf16.mxu1 %v1621_v38  ;;  %v814_v62 = vld [vmem:[#allocation8 + $0x20] sm:$0xff] }
  0x9b   : > { %v818_v4 = vld [vmem:[#allocation8 + $0x40] sm:$0xff] }
  0x9d   : > { %1596 = vmatpush3.bf16.msra.mxu0 %v1593_v27  ;;  %1624 = vmatpush3.bf16.msra.mxu1 %v1621_v38 }
  0x9e   : > { %1598 = vmatprep.subr.bf16.mxu0 %v1597_v33  ;;  %1626 = vmatprep.subr.bf16.mxu1 %v1625_v57 }
  0xa1   : > { %1600 = vmatpush3.bf16.msra.mxu0 %v1597_v33  ;;  %1628 = vmatpush3.bf16.msra.mxu1 %v1625_v57  ;;  %v811_v57 = vld [vmem:[#allocation8 + $0x8] sm:$0xff] }
  0xa2   : > { %1602 = vmatprep.subr.bf16.mxu0 %v1601_v39  ;;  %1630 = vmatprep.subr.bf16.mxu1 %v1629_v60  ;;  %v1669_v59 = vpack.c.bf16 %v811_v57, %v810_v56 }
  0xa5   : > { %1604 = vmatpush3.bf16.msra.mxu0 %v1601_v39  ;;  %1632 = vmatpush3.bf16.msra.mxu1 %v1629_v60  ;;  %v813_v60 = vld [vmem:[#allocation8 + $0x18] sm:$0xff] }
  0xa6   : > { %1634 = vmatprep.subr.bf16.mxu1 %v1633_v63  ;;  %1638 = vmatprep.subr.bf16.mxu0 %v1637_v3  ;;  %v1673_v61 = vpack.c.bf16 %v813_v60, %v812_v58 }
  0xa8   : > { %1382 = vmatmul.mubr.f32.vlgmr.msra.gmra.mrb[0].mxu0 %v263_v40 }
  0xa9   : > { %1384 = vmatprep.mubr.f32.mxu0 %v264_v41  ;;  %1636 = vmatpush3.bf16.msra.mxu1 %v1633_v63  ;;  %v815_v63 = vld [vmem:[#allocation8 + $0x28] sm:$0xff] }
  0xaa   : > { %1640 = vmatpush3.bf16.msra.mxu0 %v1637_v3  ;;  %1670 = vmatprep.subr.bf16.mxu1 %v1669_v59  ;;  %v1677_v0 = vpack.c.bf16 %v815_v63, %v814_v62  ;;  %v1681_v3 = vpack.c.bf16 %v817_v2, %v816_v1 }
  0xab   : > { %1642 = vmatprep.subr.bf16.mxu0 %v1641_v5 }
  0xac   : > { %1385 = vmatmul.mubr.f32.gmra.mrb[2].mxu0 %v265_v42 }
  0xad   : > { %1387 = vmatprep.mubr.f32.mxu0 %v266_v43 }
  0xae   : > { %1644 = vmatpush3.bf16.msra.mxu0 %v1641_v5  ;;  %v819_v5 = vld [vmem:[#allocation8 + $0x48] sm:$0xff] }
  0xaf   : > { %1646 = vmatprep.subr.bf16.mxu0 %v1645_v8  ;;  %v1685_v6 = vpack.c.bf16 %v819_v5, %v818_v4 }
  0xb0   : > { %1388 = vmatmul.mubr.f32.gmra.mrb[4].mxu0 %v267_v44 }
  0xb1   : > { %1390 = vmatprep.mubr.f32.mxu0 %v268_v45 }
  0xb2   : > { %1648 = vmatpush3.bf16.msra.mxu0 %v1645_v8 }
  0xb3   : > { %1650 = vmatprep.subr.bf16.mxu0 %v1649_v11 }
  0xb4   : > { %1391 = vmatmul.mubr.f32.gmra.mrb[6].mxu0 %v269_v46 }
  0xb5   : > { %1393 = vmatprep.mubr.f32.mxu0 %v270_v47  ;;  %v643_v47 = vld [vmem:[#allocation7 + $0xd0] sm:$0xff] }
  0xb6   : > { %1652 = vmatpush3.bf16.msra.mxu0 %v1649_v11 }
  0xb7   : > { %1654 = vmatprep.subr.bf16.mxu0 %v1653_v14 }
  0xb8   : > { %1394 = vmatmul.mubr.f32.gmra.mrb[8].mxu0 %v271_v48  ;;  %v644_v48 = vld [vmem:[#allocation7 + $0xd8] sm:$0xff] }
  0xb9   : > { %1396 = vmatprep.mubr.f32.mxu0 %v272_v49  ;;  %v1657_v49 = vpack.c.bf16 %v644_v48, %v643_v47 }
  0xba   : > { %1656 = vmatpush3.bf16.msra.mxu0 %v1653_v14 }
  0xbb   : > { %1658 = vmatprep.subr.bf16.mxu0 %v1657_v49 }
  0xbc   : > { %1397 = vmatmul.mubr.f32.gmra.mrb[10].mxu0 %v273_v50  ;;  %v645_v50 = vld [vmem:[#allocation7 + $0xe0] sm:$0xff] }
  0xbd   : > { %1399 = vmatprep.mubr.f32.mxu0 %v274_v51  ;;  %v646_v51 = vld [vmem:[#allocation7 + $0xe8] sm:$0xff] }
  0xbe   : > { %1660 = vmatpush3.bf16.msra.mxu0 %v1657_v49 }
  0xc0   : > { %1400 = vmatmul.mubr.f32.gmra.mrb[12].mxu0 %v275_v52  ;;  %v1661_v52 = vpack.c.bf16 %v646_v51, %v645_v50 }
  0xc1   : > { %1402 = vmatprep.mubr.f32.mxu0 %v276_v53  ;;  %v647_v53 = vld [vmem:[#allocation7 + $0xf0] sm:$0xff] }
  0xc2   : > { %1662 = vmatprep.subr.bf16.mxu0 %v1661_v52 }
  0xc3   : > { %1664 = vmatpush3.bf16.msra.mxu0 %v1661_v52 }
  0xc4   : > { %1403 = vmatmul.mubr.f32.gmra.mrb[14].mxu0 %v277_v54  ;;  %v648_v54 = vld [vmem:[#allocation7 + $0xf8] sm:$0xff] }
  0xc5   : > { %v1665_v55 = vpack.c.bf16 %v648_v54, %v647_v53 }
  0xc7   : > { %1666 = vmatprep.subr.bf16.mxu0 %v1665_v55 }
  0xc8   : > { %1668 = vmatpush3.bf16.msra.mxu0 %v1665_v55 }
 0x17b   : > { %v1383_v15 = vpop.f32.mrb[0].mxu0 }
 0x17c   : > { %v360_v16 = vpop.f32.mrb[1].mxu0 }
 0x17d   : > { %1782 = vtanh.f32 %v360_v16 }
 0x17e   : > { %1784 = vtanh.f32 %v1383_v15 }
 0x17f   : > { %v1386_v17 = vpop.f32.mrb[2].mxu0 }
 0x180   : > { %v370_v18 = vpop.f32.mrb[3].mxu0 }
 0x181   : > { %1786 = vtanh.f32 %v370_v18 }
 0x182   : > { %1788 = vtanh.f32 %v1386_v17 }
 0x183   : > { %v1389_v19 = vpop.f32.mrb[4].mxu0 }
 0x184   : > { %v380_v20 = vpop.f32.mrb[5].mxu0 }
 0x185   : > { %1790 = vtanh.f32 %v380_v20 }
 0x186   : > { %1792 = vtanh.f32 %v1389_v19 }
 0x187   : > { %v1783_v21 = vpop.eup %1782  ;;  %v1392_v22 = vpop.f32.mrb[6].mxu0 }
 0x188   : > { %v1785_v23 = vpop.eup %1784  ;;  %v390_v24 = vpop.f32.mrb[7].mxu0  ;;  %1437 = vmatprep.mubr.f32.mxu1 %v1783_v21 }
 0x189   : > { %1794 = vtanh.f32 %v390_v24  ;;  %1438 = vmatmul.mubr.f32.vlgmr.msra.gmra.mrb[0].mxu1 %v1785_v23 }
 0x18a   : > { %1796 = vtanh.f32 %v1392_v22  ;;  %1672 = vmatpush3.bf16.msra.mxu1 %v1669_v59 }
 0x18b   : > { %v1787_v25 = vpop.eup %1786  ;;  %v1395_v26 = vpop.f32.mrb[8].mxu0  ;;  %1674 = vmatprep.subr.bf16.mxu1 %v1673_v61 }
 0x18c   : > { %v1789_v27 = vpop.eup %1788  ;;  %v400_v28 = vpop.f32.mrb[9].mxu0  ;;  %1440 = vmatprep.mubr.f32.mxu1 %v1787_v25 }
 0x18d   : > { %1798 = vtanh.f32 %v400_v28  ;;  %1441 = vmatmul.mubr.f32.gmra.mrb[2].mxu1 %v1789_v27 }
 0x18e   : > { %1800 = vtanh.f32 %v1395_v26  ;;  %1676 = vmatpush3.bf16.msra.mxu1 %v1673_v61 }
 0x18f   : > { %v1791_v29 = vpop.eup %1790  ;;  %v1398_v30 = vpop.f32.mrb[10].mxu0  ;;  %1678 = vmatprep.subr.bf16.mxu1 %v1677_v0 }
 0x190   : > { %v1793_v31 = vpop.eup %1792  ;;  %v410_v32 = vpop.f32.mrb[11].mxu0  ;;  %1443 = vmatprep.mubr.f32.mxu1 %v1791_v29 }
 0x191   : > { %1802 = vtanh.f32 %v410_v32  ;;  %1444 = vmatmul.mubr.f32.gmra.mrb[4].mxu1 %v1793_v31 }
 0x192   : > { %1804 = vtanh.f32 %v1398_v30  ;;  %1680 = vmatpush3.bf16.msra.mxu1 %v1677_v0 }
 0x193   : > { %v1795_v33 = vpop.eup %1794  ;;  %v1401_v34 = vpop.f32.mrb[12].mxu0  ;;  %1682 = vmatprep.subr.bf16.mxu1 %v1681_v3 }
 0x194   : > { %v1797_v35 = vpop.eup %1796  ;;  %v420_v36 = vpop.f32.mrb[13].mxu0  ;;  %1446 = vmatprep.mubr.f32.mxu1 %v1795_v33 }
 0x195   : > { %1806 = vtanh.f32 %v420_v36  ;;  %1447 = vmatmul.mubr.f32.gmra.mrb[6].mxu1 %v1797_v35 }
 0x196   : > { %1808 = vtanh.f32 %v1401_v34  ;;  %1684 = vmatpush3.bf16.msra.mxu1 %v1681_v3 }
 0x197   : > { %v1799_v37 = vpop.eup %1798  ;;  %v1404_v38 = vpop.f32.mrb[14].mxu0  ;;  %1686 = vmatprep.subr.bf16.mxu1 %v1685_v6 }
 0x198   : > { %v1801_v39 = vpop.eup %1800  ;;  %v430_v40 = vpop.f32.mrb[15].mxu0  ;;  %1449 = vmatprep.mubr.f32.mxu1 %v1799_v37 }
 0x199   : > { %1810 = vtanh.f32 %v430_v40  ;;  %1450 = vmatmul.mubr.f32.gmra.mrb[8].mxu1 %v1801_v39  ;;  %v820_v39 = vld [vmem:[#allocation8 + $0x50] sm:$0xff]  ;;  %v821_v40 = vld [vmem:[#allocation8 + $0x58] sm:$0xff] }
 0x19a   : > { %1812 = vtanh.f32 %v1404_v38  ;;  %1688 = vmatpush3.bf16.msra.mxu1 %v1685_v6 }
 0x19b   : > { %v1803_v41 = vpop.eup %1802 }
 0x19c   : > { %v1805_v42 = vpop.eup %1804  ;;  %1452 = vmatprep.mubr.f32.mxu1 %v1803_v41  ;;  %v1689_v41 = vpack.c.bf16 %v821_v40, %v820_v39 }
 0x19d   : > { %1453 = vmatmul.mubr.f32.gmra.mrb[10].mxu1 %v1805_v42  ;;  %v822_v42 = vld [vmem:[#allocation8 + $0x60] sm:$0xff] }
 0x19e   : > { %1690 = vmatprep.subr.bf16.mxu1 %v1689_v41 }
 0x19f   : > { %v1807_v43 = vpop.eup %1806  ;;  %1692 = vmatpush3.bf16.msra.mxu1 %v1689_v41 }
 0x1a0   : > { %v1809_v44 = vpop.eup %1808  ;;  %1455 = vmatprep.mubr.f32.mxu1 %v1807_v43  ;;  %v823_v43 = vld [vmem:[#allocation8 + $0x68] sm:$0xff] }
 0x1a1   : > { %1456 = vmatmul.mubr.f32.gmra.mrb[12].mxu1 %v1809_v44  ;;  %v1693_v44 = vpack.c.bf16 %v823_v43, %v822_v42 }
 0x1a3   : > { %v1811_v45 = vpop.eup %1810  ;;  %1694 = vmatprep.subr.bf16.mxu1 %v1693_v44 }
 0x1a4   : > { %v1813_v46 = vpop.eup %1812  ;;  %1458 = vmatprep.mubr.f32.mxu1 %v1811_v45  ;;  %1696 = vmatpush3.bf16.msra.mxu1 %v1693_v44  ;;  %v824_v45 = vld [vmem:[#allocation8 + $0x70] sm:$0xff] }
 0x1a5   : > { %1459 = vmatmul.mubr.f32.gmra.mrb[14].mxu1 %v1813_v46  ;;  %v825_v46 = vld [vmem:[#allocation8 + $0x78] sm:$0xff] }
 0x1a6   : > { %v1697_v47 = vpack.c.bf16 %v825_v46, %v824_v45 }
 0x1a8   : > { %1698 = vmatprep.subr.bf16.mxu1 %v1697_v47 }
 0x1a9   : > { %1700 = vmatpush3.bf16.msra.mxu1 %v1697_v47 }
 0x25c   : > { %v1439_v7 = vpop.f32.mrb[0].mxu1 }
 0x25d   : > { %v537_v8 = vpop.f32.mrb[1].mxu1 }
 0x25e   : > { %1814 = vtanh.f32 %v537_v8 }
 0x25f   : > { %1816 = vtanh.f32 %v1439_v7 }
 0x260   : > { %v1442_v9 = vpop.f32.mrb[2].mxu1 }
 0x261   : > { %v547_v10 = vpop.f32.mrb[3].mxu1 }
 0x262   : > { %1818 = vtanh.f32 %v547_v10 }
 0x263   : > { %1820 = vtanh.f32 %v1442_v9 }
 0x264   : > { %v1445_v11 = vpop.f32.mrb[4].mxu1 }
 0x265   : > { %v557_v12 = vpop.f32.mrb[5].mxu1 }
 0x266   : > { %1822 = vtanh.f32 %v557_v12 }
 0x267   : > { %1824 = vtanh.f32 %v1445_v11 }
 0x268   : > { %v1815_v13 = vpop.eup %1814  ;;  %v1448_v14 = vpop.f32.mrb[6].mxu1 }
 0x269   : > { %v1817_v15 = vpop.eup %1816  ;;  %v567_v16 = vpop.f32.mrb[7].mxu1  ;;  %1493 = vmatprep.mubr.f32.mxu0 %v1815_v13 }
 0x26a   : > { %1826 = vtanh.f32 %v567_v16  ;;  %1494 = vmatmul.mubr.f32.vlgmr.msra.gmra.mrb[16].mxu0 %v1817_v15 }
 0x26b   : > { %1828 = vtanh.f32 %v1448_v14 }
 0x26c   : > { %v1819_v17 = vpop.eup %1818  ;;  %v1451_v18 = vpop.f32.mrb[8].mxu1 }
 0x26d   : > { %v1821_v19 = vpop.eup %1820  ;;  %v577_v20 = vpop.f32.mrb[9].mxu1  ;;  %1496 = vmatprep.mubr.f32.mxu0 %v1819_v17 }
 0x26e   : > { %1830 = vtanh.f32 %v577_v20  ;;  %1497 = vmatmul.mubr.f32.gmra.mrb[18].mxu0 %v1821_v19 }
 0x26f   : > { %1832 = vtanh.f32 %v1451_v18 }
 0x270   : > { %v1823_v21 = vpop.eup %1822  ;;  %v1454_v22 = vpop.f32.mrb[10].mxu1 }
 0x271   : > { %v1825_v23 = vpop.eup %1824  ;;  %v587_v24 = vpop.f32.mrb[11].mxu1  ;;  %1499 = vmatprep.mubr.f32.mxu0 %v1823_v21 }
 0x272   : > { %1834 = vtanh.f32 %v587_v24  ;;  %1500 = vmatmul.mubr.f32.gmra.mrb[20].mxu0 %v1825_v23 }
 0x273   : > { %1836 = vtanh.f32 %v1454_v22 }
 0x274   : > { %v1827_v25 = vpop.eup %1826  ;;  %v1457_v26 = vpop.f32.mrb[12].mxu1 }
 0x275   : > { %v1829_v27 = vpop.eup %1828  ;;  %v597_v28 = vpop.f32.mrb[13].mxu1  ;;  %1502 = vmatprep.mubr.f32.mxu0 %v1827_v25 }
 0x276   : > { %1838 = vtanh.f32 %v597_v28  ;;  %1503 = vmatmul.mubr.f32.gmra.mrb[22].mxu0 %v1829_v27 }
 0x277   : > { %1840 = vtanh.f32 %v1457_v26 }
 0x278   : > { %v1831_v29 = vpop.eup %1830  ;;  %v1460_v30 = vpop.f32.mrb[14].mxu1 }
 0x279   : > { %v1833_v31 = vpop.eup %1832  ;;  %v607_v32 = vpop.f32.mrb[15].mxu1  ;;  %1505 = vmatprep.mubr.f32.mxu0 %v1831_v29 }
 0x27a   : > { %1842 = vtanh.f32 %v607_v32  ;;  %1506 = vmatmul.mubr.f32.gmra.mrb[24].mxu0 %v1833_v31 }
 0x27b   : > { %1844 = vtanh.f32 %v1460_v30 }
 0x27c   : > { %v1835_v33 = vpop.eup %1834 }
 0x27d   : > { %v1837_v34 = vpop.eup %1836  ;;  %1508 = vmatprep.mubr.f32.mxu0 %v1835_v33 }
 0x27e   : > { %1509 = vmatmul.mubr.f32.gmra.mrb[26].mxu0 %v1837_v34 }
 0x280   : > { %v1839_v35 = vpop.eup %1838 }
 0x281   : > { %v1841_v36 = vpop.eup %1840  ;;  %1511 = vmatprep.mubr.f32.mxu0 %v1839_v35 }
 0x282   : > { %1512 = vmatmul.mubr.f32.gmra.mrb[28].mxu0 %v1841_v36 }
 0x284   : > { %v1843_v37 = vpop.eup %1842 }
 0x285   : > { %v1845_v38 = vpop.eup %1844  ;;  %1514 = vmatprep.mubr.f32.mxu0 %v1843_v37 }
 0x286   : > { %1515 = vmatmul.mubr.f32.gmra.mrb[30].mxu0 %v1845_v38 }
 0x33d   : > { %v1495_v48 = vpop.f32.mrb[16].mxu0 }
 0x33e   : > { %v715_v49 = vpop.f32.mrb[17].mxu0 }
 0x33f   : > { %1846 = vtanh.f32 %v715_v49 }
 0x340   : > { %1848 = vtanh.f32 %v1495_v48 }
 0x341   : > { %v1498_v50 = vpop.f32.mrb[18].mxu0 }
 0x342   : > { %v725_v51 = vpop.f32.mrb[19].mxu0 }
 0x343   : > { %1850 = vtanh.f32 %v725_v51 }
 0x344   : > { %1852 = vtanh.f32 %v1498_v50 }
 0x345   : > { %v1501_v52 = vpop.f32.mrb[20].mxu0 }
 0x346   : > { %v735_v53 = vpop.f32.mrb[21].mxu0 }
 0x347   : > { %1854 = vtanh.f32 %v735_v53 }
 0x348   : > { %1856 = vtanh.f32 %v1501_v52 }
 0x349   : > { %v1847_v54 = vpop.eup %1846  ;;  %v1504_v55 = vpop.f32.mrb[22].mxu0 }
 0x34a   : > { %v1849_v56 = vpop.eup %1848  ;;  %v745_v57 = vpop.f32.mrb[23].mxu0  ;;  %1549 = vmatprep.mubr.f32.mxu1 %v1847_v54 }
 0x34b   : > { %1858 = vtanh.f32 %v745_v57  ;;  %1550 = vmatmul.mubr.f32.vlgmr.msra.gmra.mrb[16].mxu1 %v1849_v56 }
 0x34c   : > { %1860 = vtanh.f32 %v1504_v55 }
 0x34d   : > { %v1851_v58 = vpop.eup %1850  ;;  %v1507_v59 = vpop.f32.mrb[24].mxu0 }
 0x34e   : > { %v1853_v60 = vpop.eup %1852  ;;  %v755_v61 = vpop.f32.mrb[25].mxu0  ;;  %1552 = vmatprep.mubr.f32.mxu1 %v1851_v58 }
 0x34f   : > { %1862 = vtanh.f32 %v755_v61  ;;  %1553 = vmatmul.mubr.f32.gmra.mrb[18].mxu1 %v1853_v60 }
 0x350   : > { %1864 = vtanh.f32 %v1507_v59 }
 0x351   : > { %v1855_v62 = vpop.eup %1854  ;;  %v1510_v63 = vpop.f32.mrb[26].mxu0 }
 0x352   : > { %v1857_v0 = vpop.eup %1856  ;;  %v765_v1 = vpop.f32.mrb[27].mxu0  ;;  %1555 = vmatprep.mubr.f32.mxu1 %v1855_v62 }
 0x353   : > { %1866 = vtanh.f32 %v765_v1  ;;  %1556 = vmatmul.mubr.f32.gmra.mrb[20].mxu1 %v1857_v0 }
 0x354   : > { %1868 = vtanh.f32 %v1510_v63 }
 0x355   : > { %v1859_v2 = vpop.eup %1858  ;;  %v1513_v3 = vpop.f32.mrb[28].mxu0 }
 0x356   : > { %v1861_v4 = vpop.eup %1860  ;;  %v775_v5 = vpop.f32.mrb[29].mxu0  ;;  %1558 = vmatprep.mubr.f32.mxu1 %v1859_v2 }
 0x357   : > { %1870 = vtanh.f32 %v775_v5  ;;  %1559 = vmatmul.mubr.f32.gmra.mrb[22].mxu1 %v1861_v4 }
 0x358   : > { %1872 = vtanh.f32 %v1513_v3 }
 0x359   : > { %v1863_v6 = vpop.eup %1862  ;;  %v1516_v7 = vpop.f32.mrb[30].mxu0 }
 0x35a   : > { %v1865_v8 = vpop.eup %1864  ;;  %v785_v9 = vpop.f32.mrb[31].mxu0  ;;  %1561 = vmatprep.mubr.f32.mxu1 %v1863_v6 }
 0x35b   : > { %1874 = vtanh.f32 %v785_v9  ;;  %1562 = vmatmul.mubr.f32.gmra.mrb[24].mxu1 %v1865_v8 }
 0x35c   : > { %1876 = vtanh.f32 %v1516_v7 }
 0x35d   : > { %v1867_v10 = vpop.eup %1866 }
 0x35e   : > { %v1869_v11 = vpop.eup %1868  ;;  %1564 = vmatprep.mubr.f32.mxu1 %v1867_v10 }
 0x35f   : > { %1565 = vmatmul.mubr.f32.gmra.mrb[26].mxu1 %v1869_v11 }
 0x361   : > { %v1871_v12 = vpop.eup %1870 }
 0x362   : > { %v1873_v13 = vpop.eup %1872  ;;  %1567 = vmatprep.mubr.f32.mxu1 %v1871_v12 }
 0x363   : > { %1568 = vmatmul.mubr.f32.gmra.mrb[28].mxu1 %v1873_v13 }
 0x365   : > { %v1875_v14 = vpop.eup %1874 }
 0x366   : > { %v1877_v15 = vpop.eup %1876  ;;  %1570 = vmatprep.mubr.f32.mxu1 %v1875_v14 }
 0x367   : > { %1571 = vmatmul.mubr.f32.gmra.mrb[30].mxu1 %v1877_v15 }
 0x41e   : > { %v1551_v16 = vpop.f32.mrb[16].mxu1 }
 0x41f   : > { %v972_v17 = vsub.f32 0.0, %v1551_v16  ;;  %v892_v18 = vpop.f32.mrb[17].mxu1 }
 0x420   : > { %v971_v19 = vsub.f32 0.0, %v892_v18 }
 0x421   : > { %v989_v20 = vmul.f32 1.442695, %v972_v17 }
 0x422   : > { %v987_v21 = vmul.f32 1.442695, %v971_v19  ;;  %v1554_v22 = vpop.f32.mrb[18].mxu1 }
 0x423   : > { %1878 = vpow2.f32 %v989_v20  ;;  %v974_v23 = vsub.f32 0.0, %v1554_v22  ;;  %v902_v24 = vpop.f32.mrb[19].mxu1 }
 0x424   : > { %1880 = vpow2.f32 %v987_v21  ;;  %v973_v25 = vsub.f32 0.0, %v902_v24 }
 0x425   : > { %v993_v26 = vmul.f32 1.442695, %v974_v23 }
 0x426   : > { %v991_v27 = vmul.f32 1.442695, %v973_v25  ;;  %v1557_v28 = vpop.f32.mrb[20].mxu1 }
 0x427   : > { %1882 = vpow2.f32 %v993_v26  ;;  %v976_v29 = vsub.f32 0.0, %v1557_v28  ;;  %v912_v30 = vpop.f32.mrb[21].mxu1 }
 0x428   : > { %1884 = vpow2.f32 %v991_v27  ;;  %v975_v31 = vsub.f32 0.0, %v912_v30 }
 0x429   : > { %v997_v32 = vmul.f32 1.442695, %v976_v29 }
 0x42a   : > { %v995_v33 = vmul.f32 1.442695, %v975_v31  ;;  %v1560_v34 = vpop.f32.mrb[22].mxu1 }
 0x42b   : > { %1886 = vpow2.f32 %v997_v32  ;;  %v978_v35 = vsub.f32 0.0, %v1560_v34  ;;  %v922_v36 = vpop.f32.mrb[23].mxu1 }
 0x42c   : > { %1888 = vpow2.f32 %v995_v33  ;;  %v977_v37 = vsub.f32 0.0, %v922_v36 }
 0x42d   : > { %v1879_v38 = vpop.eup %1878  ;;  %v1001_v39 = vmul.f32 1.442695, %v978_v35 }
 0x42e   : > { %v1881_v40 = vpop.eup %1880  ;;  %v1020_v41 = vadd.f32 1.0, %v1879_v38  ;;  %v999_v42 = vmul.f32 1.442695, %v977_v37  ;;  %v1563_v43 = vpop.f32.mrb[24].mxu1 }
 0x42f   : > { %v1019_v44 = vadd.f32 1.0, %v1881_v40  ;;  %1890 = vpow2.f32 %v1001_v39  ;;  %v980_v45 = vsub.f32 0.0, %v1563_v43  ;;  %v932_v46 = vpop.f32.mrb[25].mxu1 }
 0x430   : > { %1892 = vrcp.f32 %v1020_v41  ;;  %v979_v47 = vsub.f32 0.0, %v932_v46 }
 0x431   : > { %v1883_v48 = vpop.eup %1882  ;;  %1894 = vrcp.f32 %v1019_v44  ;;  %v1005_v49 = vmul.f32 1.442695, %v980_v45 }
 0x432   : > { %v1885_v50 = vpop.eup %1884  ;;  %v1022_v51 = vadd.f32 1.0, %v1883_v48  ;;  %1896 = vpow2.f32 %v999_v42  ;;  %v1003_v52 = vmul.f32 1.442695, %v979_v47  ;;  %v1566_v53 = vpop.f32.mrb[26].mxu1 }
 0x433   : > { %v1021_v54 = vadd.f32 1.0, %v1885_v50  ;;  %1898 = vpow2.f32 %v1005_v49  ;;  %v982_v55 = vsub.f32 0.0, %v1566_v53  ;;  %v942_v56 = vpop.f32.mrb[27].mxu1 }
 0x434   : > { %1900 = vrcp.f32 %v1022_v51  ;;  %v981_v57 = vsub.f32 0.0, %v942_v56 }
 0x435   : > { %v1887_v58 = vpop.eup %1886  ;;  %1902 = vrcp.f32 %v1021_v54  ;;  %v1009_v59 = vmul.f32 1.442695, %v982_v55 }
 0x436   : > { %v1889_v60 = vpop.eup %1888  ;;  %v1024_v61 = vadd.f32 1.0, %v1887_v58  ;;  %1904 = vpow2.f32 %v1003_v52  ;;  %v1007_v62 = vmul.f32 1.442695, %v981_v57  ;;  %v1569_v63 = vpop.f32.mrb[28].mxu1 }
 0x437   : > { %v1023_v0 = vadd.f32 1.0, %v1889_v60  ;;  %1906 = vpow2.f32 %v1009_v59  ;;  %v984_v1 = vsub.f32 0.0, %v1569_v63  ;;  %v952_v2 = vpop.f32.mrb[29].mxu1 }
 0x438   : > { %1908 = vrcp.f32 %v1024_v61  ;;  %v983_v3 = vsub.f32 0.0, %v952_v2 }
 0x439   : > { %v1891_v4 = vpop.eup %1890  ;;  %1910 = vrcp.f32 %v1023_v0  ;;  %v1013_v5 = vmul.f32 1.442695, %v984_v1 }
 0x43a   : > { %v1893_v6 = vpop.eup %1892  ;;  %v1026_v7 = vadd.f32 1.0, %v1891_v4  ;;  %1912 = vpow2.f32 %v1007_v62  ;;  %v1011_v8 = vmul.f32 1.442695, %v983_v3  ;;  %v1572_v9 = vpop.f32.mrb[30].mxu1 }
 0x43b   : > { %v1895_v10 = vpop.eup %1894  ;;  %1068 = vst [vmem:[%s2409_s21 + $0x8] sm:$0xff] %v1893_v6  ;;  %1914 = vpow2.f32 %v1013_v5  ;;  %v986_v11 = vsub.f32 0.0, %v1572_v9  ;;  %v962_v12 = vpop.f32.mrb[31].mxu1 }
 0x43c   : > { %v1897_v13 = vpop.eup %1896  ;;  %1067 = vst [vmem:[%s2409_s21] sm:$0xff] %v1895_v10  ;;  %1916 = vrcp.f32 %v1026_v7  ;;  %v985_v14 = vsub.f32 0.0, %v962_v12 }
 0x43d   : > { %v1899_v15 = vpop.eup %1898  ;;  %v1025_v16 = vadd.f32 1.0, %v1897_v13  ;;  %1918 = vpow2.f32 %v1011_v8  ;;  %v1017_v17 = vmul.f32 1.442695, %v986_v11 }
 0x43e   : > { %v1901_v18 = vpop.eup %1900  ;;  %v1028_v19 = vadd.f32 1.0, %v1899_v15  ;;  %v1015_v20 = vmul.f32 1.442695, %v985_v14 }
 0x43f   : > { %v1903_v21 = vpop.eup %1902  ;;  %1070 = vst [vmem:[%s2409_s21 + $0x18] sm:$0xff] %v1901_v18  ;;  %1920 = vrcp.f32 %v1025_v16 }
 0x440   : > { %v1905_v22 = vpop.eup %1904  ;;  %1069 = vst [vmem:[%s2409_s21 + $0x10] sm:$0xff] %v1903_v21  ;;  %1922 = vrcp.f32 %v1028_v19 }
 0x441   : > { %v1907_v23 = vpop.eup %1906  ;;  %v1027_v24 = vadd.f32 1.0, %v1905_v22  ;;  %1924 = vpow2.f32 %v1017_v17 }
 0x442   : > { %v1909_v25 = vpop.eup %1908  ;;  %v1030_v26 = vadd.f32 1.0, %v1907_v23  ;;  %1926 = vpow2.f32 %v1015_v20 }
 0x443   : > { %v1911_v27 = vpop.eup %1910  ;;  %1072 = vst [vmem:[%s2409_s21 + $0x28] sm:$0xff] %v1909_v25  ;;  %1928 = vrcp.f32 %v1027_v24 }
 0x444   : > { %v1913_v28 = vpop.eup %1912  ;;  %1071 = vst [vmem:[%s2409_s21 + $0x20] sm:$0xff] %v1911_v27  ;;  %1930 = vrcp.f32 %v1030_v26 }
 0x445   : > { %v1915_v29 = vpop.eup %1914  ;;  %v1029_v30 = vadd.f32 1.0, %v1913_v28 }
 0x446   : > { %v1917_v31 = vpop.eup %1916  ;;  %v1032_v32 = vadd.f32 1.0, %v1915_v29 }
 0x447   : > { %v1919_v33 = vpop.eup %1918  ;;  %1074 = vst [vmem:[%s2409_s21 + $0x38] sm:$0xff] %v1917_v31  ;;  %1932 = vrcp.f32 %v1029_v30 }
 0x448   : > { %1934 = vrcp.f32 %v1032_v32  ;;  %v1031_v34 = vadd.f32 1.0, %v1919_v33 }
 0x449   : > { %v1921_v35 = vpop.eup %1920 }
 0x44a   : > { %v1923_v36 = vpop.eup %1922  ;;  %1073 = vst [vmem:[%s2409_s21 + $0x30] sm:$0xff] %v1921_v35  ;;  %1936 = vrcp.f32 %v1031_v34 }
 0x44b   : > { %v1925_v37 = vpop.eup %1924  ;;  %1076 = vst [vmem:[%s2409_s21 + $0x48] sm:$0xff] %v1923_v36 }
 0x44c   : > { %v1927_v38 = vpop.eup %1926  ;;  %v1034_v39 = vadd.f32 1.0, %v1925_v37 }
 0x44d   : > { %v1929_v40 = vpop.eup %1928  ;;  %v1033_v41 = vadd.f32 1.0, %v1927_v38 }
 0x44e   : > { %v1931_v42 = vpop.eup %1930  ;;  %1075 = vst [vmem:[%s2409_s21 + $0x40] sm:$0xff] %v1929_v40  ;;  %1938 = vrcp.f32 %v1034_v39 }
 0x44f   : > { %1078 = vst [vmem:[%s2409_s21 + $0x58] sm:$0xff] %v1931_v42  ;;  %1940 = vrcp.f32 %v1033_v41 }
 0x451   : > { %v1933_v43 = vpop.eup %1932 }
 0x452   : > { %v1935_v44 = vpop.eup %1934  ;;  %1077 = vst [vmem:[%s2409_s21 + $0x50] sm:$0xff] %v1933_v43 }
 0x453   : > { %1080 = vst [vmem:[%s2409_s21 + $0x68] sm:$0xff] %v1935_v44 }
 0x454   : > { %v1937_v45 = vpop.eup %1936 }
 0x455   : > { %1079 = vst [vmem:[%s2409_s21 + $0x60] sm:$0xff] %v1937_v45 }
 0x458   : > { %v1939_v46 = vpop.eup %1938 }
 0x459   : > { %v1941_v47 = vpop.eup %1940  ;;  %1082 = vst [vmem:[%s2409_s21 + $0x78] sm:$0xff] %v1939_v46 }
 0x45a   : > { %1081 = vst [vmem:[%s2409_s21 + $0x70] sm:$0xff] %v1941_v47 }
 0x45b   : > { %2069 = shalt.err (!%p2066_p4)
}
 0x45c   : > { %s2070_s5 = scalar_lea.hbm %s2430_s8, 2048  ;;  %s2074_s25 = scalar_lea.hbm %s2482_s4, 4096 }
 0x45d   : > { %p2071_p9 = scmp.ne.s32.totalorder %s2430_s8, %s2070_s5  ;;  %p2075_p8 = scmp.lt.u32.totalorder %s2430_s8, %s2482_s4 }
 0x45e   : > { %p2076_p13 = scmp.lt.u32.totalorder %s2074_s25, %s2070_s5  ;;  %p2078_p10 = scmp.lt.u32.totalorder %s2070_s5, %s2430_s8 }
 0x45f   : > { %p2072_p0 = pnand %p2071_p9, %p2320_p5 }
 0x460   : > { %p2077_p6 = por %p2076_p13, %p2075_p8 }
 0x461   : > { %p2073_p11 = pneg %p2072_p0 }
 0x462   : > { %p2079_p3 = por %p2078_p10, %p2077_p6 }
 0x464   : > { %p2080_p7 = pnand %p2079_p3, %p2073_p11 }
 0x466   : > { %2083 = shalt.err (!%p2080_p7)
}
 0x467   : > { %s2139_s21 = smov 128   ;;  %s2140_s23 = smov 8  }
 0x468   : > { %1715 = dma.vmem_to_hbm [thread:$0]  (%p2320_p5), %s2432_s14, 2048, %s2430_s8, %s1084_s28, %s2139_s21, %s2139_s21, %s2140_s23  }
 0x469 PF: > { %s1112_s20 = sand.u32 1, %s2118_s15   ;;  %p2500_p12 = scmp.ne.s32.totalorder %s2487_s22, 0 }
 0x46a   : > { %p2501_p1 = scmp.ge.s32.totalorder %s2130_s18, 2  ;;  %s1113_s6 = scalar_lea.sflag [#allocation4], %s1112_s20 }
 0x46c   : > { %p1732_p2 = pnand %p2501_p1, %p2500_p12 }
 0x46e   : > { %2113 = dma.done.wait (!%p1732_p2), %s1113_s6, 2048  }
 0x46f   : > { %2115 = vsyncadd (!%p1732_p2), %s1113_s6, 4294965248  ;;  %p19_p4 = scmp.ge.s32.totalorder %s2306_s10, 4   ;;  %s2502_s15 = smov %s2122_s16 }
 0x470   : > { %s2503_s16 = smov %s2126_s17  ;;  %s2504_s17 = smov %s2316_s12 }
 0x471   : > { %s2505_s18 = smov %s2306_s10  ;;  %21 = sbr.rel (!%p19_p4) target bundleno = 7 (0x7), region = 94 }
 0x478   :  { %1118 = vsyncpa [#allocation3], 1 }
 0x479   :  { %1120 = vsyncpa [#allocation3 + $0x1], 1 }
 0x47a   :  { %1121 = vsyncpa [#allocation6], 1 }
 0x47b   :  { %1122 = vsyncpa [#allocation9], 1 }
 0x47c   :  { %1123 = vsyncpa [#allocation4], 1 }
 0x47d   :  { %1125 = vsyncpa [#allocation4 + $0x1], 1 }

</bundles_post_ra>
